<compile_context>
chip_gen: v7x
topology: tpu7x:2x2x1
jax: 0.10.0
libtpu: 0.0.40
codegen_flags: <defaults>
</compile_context>

<pallas_src>
import functools

import jax
import jax.numpy as jnp
from jax.experimental import pallas as pl
from jax.experimental.pallas import tpu as pltpu


# --------------------------------------------------------------------------
# Kernels
# --------------------------------------------------------------------------
def _mlp_kernel_resident(x_ref, w1_ref, b1_ref, w2_ref, b2_ref, o_ref, *,
                         elem_dtype):
    """Weights fully VMEM-resident; one batch tile per grid step."""
    # fc1 on the MXU with f32 accumulation.
    h = jnp.dot(x_ref[...], w1_ref[...], preferred_element_type=jnp.float32)
    # bias + ReLU in elem_dtype (bf16 on v6e/v7x, f32 on v5e).
    h = jnp.maximum(h.astype(elem_dtype) + b1_ref[...], 0)
    # fc2 on the MXU (bf16 operands), f32 result + f32 bias, single store.
    out = jnp.dot(h.astype(w2_ref.dtype), w2_ref[...],
                  preferred_element_type=jnp.float32)
    o_ref[...] = (out + b2_ref[...].astype(jnp.float32)).astype(o_ref.dtype)


def _mlp_kernel_streamed(x_ref, w1_ref, b1_ref, w2_ref, b2_ref, o_ref,
                         acc_ref, *, elem_dtype):
    """Grid (i batch, j out-tile, k hidden-chunk); k is the reduction axis."""
    k = pl.program_id(2)

    @pl.when(k == 0)
    def _():
        # Fold the fc2 bias into the f32 accumulator init (hoisted broadcast).
        acc_ref[...] = jnp.broadcast_to(
            b2_ref[...].astype(jnp.float32), acc_ref.shape)

    h = jnp.dot(x_ref[...], w1_ref[...], preferred_element_type=jnp.float32)
    h = jnp.maximum(h.astype(elem_dtype) + b1_ref[...], 0)
    acc_ref[...] += jnp.dot(h.astype(w2_ref.dtype), w2_ref[...],
                            preferred_element_type=jnp.float32)

    @pl.when(k == pl.num_programs(2) - 1)
    def _():
        o_ref[...] = acc_ref[...].astype(o_ref.dtype)


# --------------------------------------------------------------------------
# Host-side helpers
# --------------------------------------------------------------------------
def _round_up(n, m):
    return ((n + m - 1) // m) * m


def _tpu_generation():
    try:
        kind = jax.devices()[0].device_kind.lower()
    except Exception:
        return 6
    for gen in (7, 6, 5, 4):
        if str(gen) in kind:
            return gen
    return 6


def _vmem_limit_bytes():
    try:
        cap = int(pltpu.get_tpu_info().vmem_capacity_bytes)
    except Exception:
        cap = 64 * 1024 * 1024            # conservative (v7x per-TC) fallback
    return int(min(cap, 128 * 1024 * 1024) * 0.9)


def _pick_tile(dim_p, cap):
    """Largest 128-multiple tile <= cap that divides dim_p (dim_p % 128 == 0)."""
    if dim_p <= cap:
        return dim_p
    for c in range(cap, 127, -128):
        if dim_p % c == 0:
            return c
    return 128


# --------------------------------------------------------------------------
# Forward wrapper
# --------------------------------------------------------------------------
@functools.partial(jax.jit, static_argnames=("out_dtype",))
def mlp_forward(x, w1, b1, w2, b2, *, out_dtype=None):
    """x: (B, In); w1: (In, H); b1: (1, H); w2: (H, Out); b2: (1, Out)."""
    B, In = x.shape
    H = w1.shape[1]
    Out = w2.shape[1]
    out_dtype = out_dtype or x.dtype
    out_bytes = jnp.dtype(out_dtype).itemsize

    gen = _tpu_generation()
    vmem_limit = _vmem_limit_bytes()
    budget = int(vmem_limit * 0.8)
    # v5e has no bf16 VALU path; keep elementwise math in f32 there.
    elem_dtype = jnp.float32 if gen <= 5 else jnp.bfloat16
    elem_bytes = jnp.dtype(elem_dtype).itemsize

    # Lane-dense (128) feature dims.
    In_p = _round_up(In, 128)
    H_p = _round_up(H, 128)
    Out_p = _round_up(Out, 128)

    # ---- Batch tile (multiple of 16 for bf16 sublane packing) -------------
    tm_cap = {5: 256, 6: 512, 7: 256}.get(gen, 256)
    TM = min(tm_cap, _round_up(B, 16))
    if gen >= 7 and -(-B // TM) == 1 and TM >= 32:
        # Two TensorCores on v7x: prefer >= 2 parallel batch tiles.
        tm_half = _round_up(TM // 2, 16)
        if B > tm_half:
            TM = tm_half

    # ---- Residency decision ------------------------------------------------
    resident_bytes = (
        2 * TM * In_p * 2            # x tile, bf16, double-buffered
        + 2 * In_p * H_p * 2         # w1 bf16 (conservatively counted x2)
        + 2 * H_p * Out_p * 2        # w2 bf16
        + 2 * (H_p * elem_bytes + Out_p * 4)   # biases
        + 2 * TM * Out_p * out_bytes           # output tile, double-buffered
        + TM * H_p * 4               # fc1 intermediate (f32)
        + TM * Out_p * 4             # fc2 f32 result before cast
    )
    use_resident = resident_bytes <= budget

    if use_resident:
        TH, TN = H_p, Out_p
    else:
        # TODO(synk): for very large In also chunk the In axis (accumulate fc1
        # partials in an h scratch) so the (TM, In_p)/(In_p, TH) blocks stay
        # bounded; not needed at these sizes.
        th_cap = 256 if gen >= 7 else 512
        tn_cap = {5: 512, 6: 1024, 7: 512}.get(gen, 512)
        TH = _pick_tile(H_p, th_cap)
        TN = _pick_tile(Out_p, tn_cap)

        def _stream_bytes(tm):
            return (2 * tm * In_p * 2 + 2 * In_p * TH * 2 + 2 * TH * TN * 2
                    + 2 * (TH * elem_bytes + TN * 4)
                    + 2 * tm * TN * out_bytes + tm * TN * 4 + tm * TH * 4)

        while TM > 64 and _stream_bytes(TM) > budget:
            TM = _round_up(TM // 2, 16)

    # Pad B UP to a multiple of the chosen TM (never shrink TM to divide B).
    B_p = _round_up(B, TM)

    # ---- Pad + cast (zeros are exact no-ops through linear/ReLU/linear) ----
    xp = jnp.pad(x, ((0, B_p - B), (0, In_p - In))).astype(jnp.bfloat16)
    w1p = jnp.pad(w1, ((0, In_p - In), (0, H_p - H))).astype(jnp.bfloat16)
    w2p = jnp.pad(w2, ((0, H_p - H), (0, Out_p - Out))).astype(jnp.bfloat16)
    b1p = jnp.pad(b1, ((0, 0), (0, H_p - H))).astype(elem_dtype)
    b2p = jnp.pad(b2, ((0, 0), (0, Out_p - Out))).astype(jnp.float32)

    if use_resident:
        n_bt = B_p // TM
        grid = (n_bt,)
        cost = pl.CostEstimate(
            flops=2 * B_p * In_p * H_p + 2 * B_p * H_p * Out_p,
            transcendentals=0,
            bytes_accessed=(xp.size * 2 + w1p.size * 2 + w2p.size * 2
                            + b1p.size * elem_bytes + b2p.size * 4
                            + B_p * Out_p * out_bytes),
        )
        out_p = pl.pallas_call(
            functools.partial(_mlp_kernel_resident, elem_dtype=elem_dtype),
            out_shape=jax.ShapeDtypeStruct((B_p, Out_p), out_dtype),
            grid_spec=pltpu.PrefetchScalarGridSpec(
                num_scalar_prefetch=0,
                grid=grid,
                in_specs=[
                    # Activations stream over the batch axis.
                    pl.BlockSpec((TM, In_p), lambda i: (i, 0)),
                    # Weights / biases: constant block index -> DMA'd once,
                    # genuinely resident across all batch tiles.
                    pl.BlockSpec((In_p, H_p), lambda i: (0, 0)),
                    pl.BlockSpec((1, H_p), lambda i: (0, 0)),
                    pl.BlockSpec((H_p, Out_p), lambda i: (0, 0)),
                    pl.BlockSpec((1, Out_p), lambda i: (0, 0)),
                ],
                out_specs=pl.BlockSpec((TM, Out_p), lambda i: (i, 0)),
            ),
            compiler_params=pltpu.CompilerParams(
                dimension_semantics=("parallel",),
                vmem_limit_bytes=vmem_limit,
            ),
            cost_estimate=cost,
        )(xp, w1p, b1p, w2p, b2p)
    else:
        n_bt = B_p // TM
        n_out = Out_p // TN
        n_h = H_p // TH
        grid = (n_bt, n_out, n_h)
        cost = pl.CostEstimate(
            # fc1 is recomputed once per out-tile in this schedule.
            flops=2 * B_p * In_p * H_p * n_out + 2 * B_p * H_p * Out_p,
            transcendentals=0,
            bytes_accessed=(xp.size * 2                       # x: once per i
                            + w1p.size * 2 * n_bt * n_out     # w1 streamed
                            + w2p.size * 2 * n_bt             # w2 streamed
                            + b1p.size * elem_bytes * n_bt * n_out
                            + b2p.size * 4 * n_bt * n_out
                            + B_p * Out_p * out_bytes),
        )
        out_p = pl.pallas_call(
            functools.partial(_mlp_kernel_streamed, elem_dtype=elem_dtype),
            out_shape=jax.ShapeDtypeStruct((B_p, Out_p), out_dtype),
            grid_spec=pltpu.PrefetchScalarGridSpec(
                num_scalar_prefetch=0,
                grid=grid,
                in_specs=[
                    pl.BlockSpec((TM, In_p), lambda i, j, k: (i, 0)),
                    pl.BlockSpec((In_p, TH), lambda i, j, k: (0, k)),
                    pl.BlockSpec((1, TH), lambda i, j, k: (0, k)),
                    pl.BlockSpec((TH, TN), lambda i, j, k: (k, j)),
                    pl.BlockSpec((1, TN), lambda i, j, k: (0, j)),
                ],
                out_specs=pl.BlockSpec((TM, TN), lambda i, j, k: (i, j)),
                scratch_shapes=[pltpu.VMEM((TM, TN), jnp.float32)],
            ),
            compiler_params=pltpu.CompilerParams(
                # batch & out tiles are independent (megacore-shardable);
                # the hidden-chunk reduction axis is "arbitrary" and last.
                dimension_semantics=("parallel", "parallel", "arbitrary"),
                vmem_limit_bytes=vmem_limit,
            ),
            cost_estimate=cost,
        )(xp, w1p, b1p, w2p, b2p)

    return out_p[:B, :Out]


def init_params(key, input_size, hidden_size, output_size, dtype=jnp.float32):
    """Deterministic init mimicking nn.Linear's U(-1/sqrt(fan_in), 1/sqrt(fan_in))."""
    k1, k2, k3, k4 = jax.random.split(key, 4)
    bound1 = 1.0 / (input_size ** 0.5)
    bound2 = 1.0 / (hidden_size ** 0.5)
    # Stored as (in, out) = transpose of the PyTorch (out, in) weight.
    w1 = jax.random.uniform(k1, (input_size, hidden_size), dtype, -bound1, bound1)
    b1 = jax.random.uniform(k2, (1, hidden_size), dtype, -bound1, bound1)
    w2 = jax.random.uniform(k3, (hidden_size, output_size), dtype, -bound2, bound2)
    b2 = jax.random.uniform(k4, (1, output_size), dtype, -bound2, bound2)
    return w1, b1, w2, b2


if __name__ == "__main__":
    batch = 8
    input_size, hidden_size, output_size = 32, 64, 16

    key = jax.random.PRNGKey(0)
    kx, kp = jax.random.split(key)
    x = jax.random.normal(kx, (batch, input_size), jnp.float32)
    w1, b1, w2, b2 = init_params(kp, input_size, hidden_size, output_size)

    out = mlp_forward(x, w1, b1, w2, b2)
    out = jax.block_until_ready(out)

    # Reference check in plain JAX (f32 math, same as the PyTorch forward).
    # bf16 MXU operands => loose tolerance vs the f32 reference.
    ref = jnp.maximum(x @ w1 + b1, 0.0) @ w2 + b2
    assert out.shape == (batch, output_size)
    assert jnp.allclose(out, ref, atol=2e-2, rtol=2e-2), \
        float(jnp.max(jnp.abs(out - ref)))

    print("KERNEL_OK")
</pallas_src>

<mosaic_0001>
module attributes {stable_mosaic.version = 11 : i64} {
  func.func @_mlp_kernel_resident(%arg0: i32, %arg1: memref<16x128xbf16, #tpu.memory_space<vmem>>, %arg2: memref<128x128xbf16, #tpu.memory_space<vmem>>, %arg3: memref<1x128xbf16, #tpu.memory_space<vmem>>, %arg4: memref<128x128xbf16, #tpu.memory_space<vmem>>, %arg5: memref<1x128xf32, #tpu.memory_space<vmem>>, %arg6: memref<16x128xf32, #tpu.memory_space<vmem>>) attributes {dimension_semantics = [#tpu.dimension_semantics<parallel>], iteration_bounds = array<i64: 1>, scalar_prefetch = 0 : i64, scratch_operands = 0 : i64, tpu.core_type = #tpu.core_type<tc>, window_params = [{transform_indices = @transform_0, window_bounds = array<i64: 16, 128>}, {pipeline_mode = #tpu.pipeline_mode<synchronous>, transform_indices = @transform_1, window_bounds = array<i64: 128, 128>}, {pipeline_mode = #tpu.pipeline_mode<synchronous>, transform_indices = @transform_2, window_bounds = array<i64: 1, 128>}, {pipeline_mode = #tpu.pipeline_mode<synchronous>, transform_indices = @transform_3, window_bounds = array<i64: 128, 128>}, {pipeline_mode = #tpu.pipeline_mode<synchronous>, transform_indices = @transform_4, window_bounds = array<i64: 1, 128>}, {transform_indices = @transform_5, window_bounds = array<i64: 16, 128>}]} {
    %c0 = arith.constant 0 : index
    %c0_0 = arith.constant 0 : index
    %0 = vector.load %arg1[%c0, %c0_0] : memref<16x128xbf16, #tpu.memory_space<vmem>>, vector<16x128xbf16>
    %c0_1 = arith.constant 0 : index
    %c0_2 = arith.constant 0 : index
    %1 = vector.load %arg2[%c0_1, %c0_2] : memref<128x128xbf16, #tpu.memory_space<vmem>>, vector<128x128xbf16>
    %cst = arith.constant dense<0.000000e+00> : vector<16x128xf32>
    %2 = tpu.matmul %0, %1, %cst {dimension_numbers = #tpu.dot_dimension_numbers<[1], [0], [0], [1], [0, 0, 1, 1], [], []>} : vector<16x128xbf16>, vector<128x128xbf16>, vector<16x128xf32> -> vector<16x128xf32>
    %3 = arith.truncf %2 : vector<16x128xf32> to vector<16x128xbf16>
    %c0_3 = arith.constant 0 : index
    %c0_4 = arith.constant 0 : index
    %4 = vector.load %arg3[%c0_3, %c0_4] : memref<1x128xbf16, #tpu.memory_space<vmem>>, vector<1x128xbf16>
    %5 = vector.broadcast %4 : vector<1x128xbf16> to vector<16x128xbf16>
    %6 = arith.addf %3, %5 : vector<16x128xbf16>
    %cst_5 = arith.constant 0.000000e+00 : bf16
    %7 = vector.broadcast %cst_5 : bf16 to vector<16x128xbf16>
    %8 = arith.maximumf %6, %7 : vector<16x128xbf16>
    %c0_6 = arith.constant 0 : index
    %c0_7 = arith.constant 0 : index
    %9 = vector.load %arg4[%c0_6, %c0_7] : memref<128x128xbf16, #tpu.memory_space<vmem>>, vector<128x128xbf16>
    %cst_8 = arith.constant dense<0.000000e+00> : vector<16x128xf32>
    %10 = tpu.matmul %8, %9, %cst_8 {dimension_numbers = #tpu.dot_dimension_numbers<[1], [0], [0], [1], [0, 0, 1, 1], [], []>} : vector<16x128xbf16>, vector<128x128xbf16>, vector<16x128xf32> -> vector<16x128xf32>
    %c0_9 = arith.constant 0 : index
    %c0_10 = arith.constant 0 : index
    %11 = vector.load %arg5[%c0_9, %c0_10] : memref<1x128xf32, #tpu.memory_space<vmem>>, vector<1x128xf32>
    %12 = vector.broadcast %11 : vector<1x128xf32> to vector<16x128xf32>
    %13 = arith.addf %10, %12 : vector<16x128xf32>
    %c0_11 = arith.constant 0 : index
    %c0_12 = arith.constant 0 : index
    %14 = vector.load %arg6[%c0_11, %c0_12] : memref<16x128xf32, #tpu.memory_space<vmem>>, vector<16x128xf32>
    tpu.vector_store %arg6[%c0_11, %c0_12], %13 {strides = array<i32>} : memref<16x128xf32, #tpu.memory_space<vmem>>, vector<16x128xf32>,
    return
  }
  func.func @transform_0(%arg0: i32) -> (i32, i32) {
    %c0_i32 = arith.constant 0 : i32
    %c0_i32_0 = arith.constant 0 : i32
    return %arg0, %c0_i32 : i32, i32
  }
  func.func @transform_1(%arg0: i32) -> (i32, i32) {
    %c0_i32 = arith.constant 0 : i32
    %c0_i32_0 = arith.constant 0 : i32
    %c0_i32_1 = arith.constant 0 : i32
    return %c0_i32, %c0_i32_0 : i32, i32
  }
  func.func @transform_2(%arg0: i32) -> (i32, i32) {
    %c0_i32 = arith.constant 0 : i32
    %c0_i32_0 = arith.constant 0 : i32
    %c0_i32_1 = arith.constant 0 : i32
    return %c0_i32, %c0_i32_0 : i32, i32
  }
  func.func @transform_3(%arg0: i32) -> (i32, i32) {
    %c0_i32 = arith.constant 0 : i32
    %c0_i32_0 = arith.constant 0 : i32
    %c0_i32_1 = arith.constant 0 : i32
    return %c0_i32, %c0_i32_0 : i32, i32
  }
  func.func @transform_4(%arg0: i32) -> (i32, i32) {
    %c0_i32 = arith.constant 0 : i32
    %c0_i32_0 = arith.constant 0 : i32
    %c0_i32_1 = arith.constant 0 : i32
    return %c0_i32, %c0_i32_0 : i32, i32
  }
  func.func @transform_5(%arg0: i32) -> (i32, i32) {
    %c0_i32 = arith.constant 0 : i32
    %c0_i32_0 = arith.constant 0 : i32
    return %arg0, %c0_i32 : i32, i32
  }
}

</mosaic_0001>

<bundles_post_ra>
// kernel: mlp_forward.1
= control target key start
LH: loop header
LB: loop body
LE: loop exit
PB: predicated region body
PF: predicated region fallthrough
CT: control target
= control target key end

     0   :  { %v359_v0 = vmov 0.0   ;;  %vm360_vm0 = vmmov 0   ;;  %v139_v18 = vlaneseq  ;;  %v361_v30 = vmov 0   ;;  %s455_s1 = inlined_call_operand.vmem [shape: bf16[128,128], index: 1, kind: input, shape index: {}]   ;;  %s456_s3 = inlined_call_operand.vmem [shape: bf16[128,128], index: 3, kind: input, shape index: {}]   ;;  %s457_s0 = inlined_call_operand.vmem [shape: bf16[16,128], index: 0, kind: input, shape index: {}]   ;;  %s458_s2 = inlined_call_operand.vmem [shape: bf16[1,128], index: 2, kind: input, shape index: {}]   ;;  %s459_s4 = inlined_call_operand.vmem [shape: f32[1,128], index: 4, kind: input, shape index: {}]   ;;  %s460_s5 = inlined_call_operand.vmem [shape: f32[16,128], index: 5, kind: output, shape index: {}]  }
   0x1   :  { %299 = vmatprep.subr.bf16.mxu0 %v359_v0  ;;  %v342_v1 = vld [vmem:[%s455_s1] sm:$0xff]   ;;  %315 = vmatprep.mubr.msk.bf16.mxu0 %vm360_vm0, %v359_v0  ;;  %v343_v2 = vld [vmem:[%s455_s1 + $0x8] sm:$0xff]   ;;  %v344_v3 = vld [vmem:[%s455_s1 + $0x10] sm:$0xff]  }
   0x2   :  { %319 = vmatprep.subr.bf16.mxu1 %v359_v0  ;;  %335 = vmatprep.mubr.msk.bf16.mxu1 %vm360_vm0, %v359_v0  ;;  %v351_v4 = vld [vmem:[%s456_s3] sm:$0xff]   ;;  %v345_v5 = vld [vmem:[%s455_s1 + $0x18] sm:$0xff]   ;;  %v352_v6 = vld [vmem:[%s456_s3 + $0x8] sm:$0xff]   ;;  %v140_v19 = vshrl.u32 %v139_v18, 7 }
   0x3   :  { %300 = vmatpush3.bf16.msra.mxu0 %v342_v1  ;;  %320 = vmatpush3.bf16.msra.mxu1 %v351_v4  ;;  %v346_v7 = vld [vmem:[%s455_s1 + $0x20] sm:$0xff]   ;;  %v353_v8 = vld [vmem:[%s456_s3 + $0x10] sm:$0xff]   ;;  %v347_v9 = vld [vmem:[%s455_s1 + $0x28] sm:$0xff]  }
   0x4   :  { %301 = vmatprep.subr.bf16.mxu0 %v359_v0  ;;  %321 = vmatprep.subr.bf16.mxu1 %v359_v0  ;;  %v354_v10 = vld [vmem:[%s456_s3 + $0x18] sm:$0xff]   ;;  %v348_v11 = vld [vmem:[%s455_s1 + $0x30] sm:$0xff]   ;;  %v355_v12 = vld [vmem:[%s456_s3 + $0x20] sm:$0xff]   ;;  %v141_v22 = vsub.s32 0, %v140_v19 }
   0x5   :  { %v349_v13 = vld [vmem:[%s455_s1 + $0x38] sm:$0xff]   ;;  %v356_v14 = vld [vmem:[%s456_s3 + $0x28] sm:$0xff]   ;;  %v350_v15 = vld [vmem:[%s457_s0] sm:$0xff]  }
   0x6   :  { %v357_v16 = vld [vmem:[%s456_s3 + $0x30] sm:$0xff]   ;;  %v358_v17 = vld [vmem:[%s456_s3 + $0x38] sm:$0xff]   ;;  %v135_v20 = vld [vmem:[%s458_s2] sm:$0x1] }
   0x7   :  { %302 = vmatpush3.bf16.msra.mxu0 %v343_v2  ;;  %322 = vmatpush3.bf16.msra.mxu1 %v352_v6  ;;  %v137_v21 = vpack.i.b16 %v135_v20, %v135_v20  ;;  %v272_v32 = vld [vmem:[%s459_s4] ss:$0 sm:$0xff] }
   0x8   :  { %303 = vmatprep.subr.bf16.mxu0 %v359_v0  ;;  %323 = vmatprep.subr.bf16.mxu1 %v359_v0 }
   0x9   :  { %v142_v25 = vrot.slane %v137_v21, %v141_v22 }
   0xb   :  { %304 = vmatpush3.bf16.msra.mxu0 %v344_v3  ;;  %324 = vmatpush3.bf16.msra.mxu1 %v353_v8 }
   0xc   :  { %305 = vmatprep.subr.bf16.mxu0 %v359_v0  ;;  %325 = vmatprep.subr.bf16.mxu1 %v359_v0 }
   0xf   :  { %306 = vmatpush3.bf16.msra.mxu0 %v345_v5  ;;  %326 = vmatpush3.bf16.msra.mxu1 %v354_v10 }
  0x10   :  { %307 = vmatprep.subr.bf16.mxu0 %v359_v0  ;;  %327 = vmatprep.subr.bf16.mxu1 %v359_v0 }
  0x13   :  { %308 = vmatpush3.bf16.msra.mxu0 %v346_v7  ;;  %328 = vmatpush3.bf16.msra.mxu1 %v355_v12 }
  0x14   :  { %309 = vmatprep.subr.bf16.mxu0 %v359_v0  ;;  %329 = vmatprep.subr.bf16.mxu1 %v359_v0 }
  0x17   :  { %310 = vmatpush3.bf16.msra.mxu0 %v347_v9  ;;  %330 = vmatpush3.bf16.msra.mxu1 %v356_v14 }
  0x18   :  { %311 = vmatprep.subr.bf16.mxu0 %v359_v0  ;;  %331 = vmatprep.subr.bf16.mxu1 %v359_v0 }
  0x1b   :  { %312 = vmatpush3.bf16.msra.mxu0 %v348_v11  ;;  %332 = vmatpush3.bf16.msra.mxu1 %v357_v16 }
  0x1c   :  { %313 = vmatprep.subr.bf16.mxu0 %v359_v0  ;;  %333 = vmatprep.subr.bf16.mxu1 %v359_v0 }
  0x1f   :  { %314 = vmatpush3.bf16.msra.mxu0 %v349_v13  ;;  %334 = vmatpush3.bf16.msra.mxu1 %v358_v17 }
  0x22   :  { %316 = vmatmul.mubr.bf16.vlgmr.msra.gmra.mrb[0].mxu0 %v350_v15 }
  0xf5   :  { %v127_v23 = vpop.f32.mrb[0].mxu0 }
  0xf6   :  { %v317_v24 = vpop.f32.mrb[1].mxu0 }
  0xf7   :  { %v130_v26 = vpop.f32.mrb[2].mxu0 }
  0xf8   :  { %v134_v27 = vpack.c.bf16 %v130_v26, %v127_v23  ;;  %v318_v28 = vpop.f32.mrb[3].mxu0 }
  0xfa   :  { %v143_v29 = vadd.bf16 %v142_v25, %v134_v27 }
  0xfc   :  { %v144_v31 = vmax.bf16 %v361_v30, %v143_v29 }
  0xfe   :  { %336 = vmatmul.mubr.bf16.vlgmr.msra.gmra.mrb[0].mxu1 %v144_v31 }
 0x1d1   :  { %v250_v33 = vpop.f32.mrb[0].mxu1 }
 0x1d2   :  { %v251_v34 = vadd.f32 %v272_v32, %v250_v33  ;;  %v337_v35 = vpop.f32.mrb[1].mxu1 }
 0x1d3   :  { %v253_v36 = vpop.f32.mrb[2].mxu1 }
 0x1d4   :  { %257 = vst [vmem:[%s460_s5] sm:$0xff] %v251_v34  ;;  %v254_v37 = vadd.f32 %v272_v32, %v253_v36  ;;  %v338_v38 = vpop.f32.mrb[3].mxu1 }
 0x1d6   :  { %258 = vst [vmem:[%s460_s5 + $0x8] sm:$0xff] %v254_v37 }

</bundles_post_ra>
